<compile_context>
chip_gen: v5e
topology: v5e:2x2
jax: 0.10.0
libtpu: 0.0.40
codegen_flags: <defaults>
</compile_context>

<pallas_src>
import jax
import jax.numpy as jnp
from jax.experimental import pallas as pl
from jax.experimental.pallas import tpu as pltpu

HIDDEN_SIZE = 4
IN_SIZE = 2
OUT_SIZE = 2

LANES = 128   # observations processed per grid step (batch on lanes)


def bird_kernel(w1_ref, w2_ref, obs_ref, probs_ref, act_ref):
    """One grid step = LANES forward passes, batch laid out on the lanes.

    w1_ref   : SMEM (HIDDEN_SIZE*IN_SIZE,)  f32  W1[j, i] row-major (scalars)
    w2_ref   : SMEM (OUT_SIZE*HIDDEN_SIZE,) f32  W2[k, j] row-major (scalars)
    obs_ref  : VMEM (IN_SIZE, LANES)        f32  feature i of obs b at [i, b]
    probs_ref: VMEM (OUT_SIZE, LANES)       f32  softmax prob of class k at [k, b]
    act_ref  : VMEM (1, LANES)              i32  argmax class per lane
    """
    x = [obs_ref[i:i + 1, :] for i in range(IN_SIZE)]            # (1, LANES) rows

    # ---- layer 1: h_j = sigmoid(sum_i W1[j,i] * x_i)  (VPU FMAs + EUP sigmoid)
    h = []
    for j in range(HIDDEN_SIZE):
        acc = w1_ref[j * IN_SIZE] * x[0]
        for i in range(1, IN_SIZE):
            acc = acc + w1_ref[j * IN_SIZE + i] * x[i]
        h.append(jax.nn.sigmoid(acc))

    # ---- layer 2: logits_k = sum_j W2[k,j] * h_j   (no XLU reductions at all)
    logits = []
    for k in range(OUT_SIZE):
        acc = w2_ref[k * HIDDEN_SIZE] * h[0]
        for j in range(1, HIDDEN_SIZE):
            acc = acc + w2_ref[k * HIDDEN_SIZE + j] * h[j]
        logits.append(acc)

    # ---- argmax from the logits (first maximal index), independent of exp/div.
    best_val = logits[0]
    best_idx = jnp.zeros_like(logits[0], dtype=jnp.int32)
    for k in range(1, OUT_SIZE):
        better = logits[k] > best_val
        best_val = jnp.where(better, logits[k], best_val)
        best_idx = jnp.where(better, jnp.int32(k), best_idx)
    act_ref[...] = best_idx

    # ---- numerically stable softmax across the OUT_SIZE rows (pairwise, VPU).
    m = logits[0]
    for k in range(1, OUT_SIZE):
        m = jnp.maximum(m, logits[k])
    es = [jnp.exp(l - m) for l in logits]
    denom = es[0]
    for k in range(1, OUT_SIZE):
        denom = denom + es[k]
    for k in range(OUT_SIZE):
        probs_ref[k:k + 1, :] = es[k] / denom      # exact divide (1e-5 tolerance)


@jax.jit
def bird_forward(obs, w1, w2):
    """obs: (B, IN_SIZE) or (IN_SIZE,) float; w1: (HIDDEN_SIZE, IN_SIZE);
    w2: (OUT_SIZE, HIDDEN_SIZE).  Returns (softmax probs, argmax action(s))."""
    obs = jnp.asarray(obs, jnp.float32)
    single = obs.ndim == 1
    if single:
        obs = obs[None, :]
    B = obs.shape[0]
    B_pad = ((B + LANES - 1) // LANES) * LANES

    # Batch on lanes: (IN_SIZE, B_pad); padded lanes are zeros (harmless:
    # sigmoid(0)=0.5 -> finite logits -> finite softmax, then sliced away).
    obs_packed = jnp.zeros((IN_SIZE, B_pad), jnp.float32).at[:, :B].set(obs.T)

    w1_flat = jnp.asarray(w1, jnp.float32).reshape(HIDDEN_SIZE * IN_SIZE)
    w2_flat = jnp.asarray(w2, jnp.float32).reshape(OUT_SIZE * HIDDEN_SIZE)

    probs_pad, act_pad = pl.pallas_call(
        bird_kernel,
        grid=(B_pad // LANES,),
        in_specs=[
            pl.BlockSpec(memory_space=pltpu.MemorySpace.SMEM),   # W1 scalars
            pl.BlockSpec(memory_space=pltpu.MemorySpace.SMEM),   # W2 scalars
            pl.BlockSpec((IN_SIZE, LANES), lambda b: (0, b)),    # obs lane block
        ],
        out_specs=(
            pl.BlockSpec((OUT_SIZE, LANES), lambda b: (0, b)),   # lane-dense
            pl.BlockSpec((1, LANES), lambda b: (0, b)),          # lane-dense
        ),
        out_shape=(
            jax.ShapeDtypeStruct((OUT_SIZE, B_pad), jnp.float32),
            jax.ShapeDtypeStruct((1, B_pad), jnp.int32),
        ),
        compiler_params=pltpu.CompilerParams(
            dimension_semantics=("parallel",)),                  # 2 TCs on v7x
    )(w1_flat, w2_flat, obs_packed)

    probs = probs_pad[:, :B].T          # (B, OUT_SIZE)
    action = act_pad[0, :B]             # (B,)
    if single:
        return probs[0], action[0]
    return probs, action


def bird_forward_ref(obs, w1, w2):
    """Pure-JAX reference matching Bird.forward semantics (batched)."""
    obs = jnp.asarray(obs, jnp.float32)
    h = jax.nn.sigmoid(jnp.einsum("bi,ji->bj", obs, w1,
                                  precision=jax.lax.Precision.HIGHEST))
    logits = jnp.einsum("bj,kj->bk", h, w2,
                        precision=jax.lax.Precision.HIGHEST)
    probs = jax.nn.softmax(logits, axis=-1)
    return probs, jnp.argmax(probs, axis=-1).astype(jnp.int32)


if __name__ == "__main__":
    key = jax.random.PRNGKey(0)
    k_obs, k_w1, k_w2 = jax.random.split(key, 3)

    # nn.Linear(..., bias=False)-style init: U(-1/sqrt(fan_in), 1/sqrt(fan_in)).
    b1 = 1.0 / jnp.sqrt(jnp.float32(IN_SIZE))
    b2 = 1.0 / jnp.sqrt(jnp.float32(HIDDEN_SIZE))
    w1 = jax.random.uniform(k_w1, (HIDDEN_SIZE, IN_SIZE), jnp.float32, -b1, b1)
    w2 = jax.random.uniform(k_w2, (OUT_SIZE, HIDDEN_SIZE), jnp.float32, -b2, b2)

    B = 8   # small demo batch; kernel handles any B via lane padding + grid
    obs_batch = jax.random.normal(k_obs, (B, IN_SIZE), jnp.float32)

    probs, actions = bird_forward(obs_batch, w1, w2)
    probs = jax.block_until_ready(probs)
    actions = jax.block_until_ready(actions)

    probs_ref, actions_ref = bird_forward_ref(obs_batch, w1, w2)
    assert jnp.allclose(probs, probs_ref, atol=1e-5, rtol=1e-5), (probs, probs_ref)
    assert jnp.array_equal(actions, actions_ref), (actions, actions_ref)

    # Single-observation path (matches Bird.forward(obs) -> scalar argmax).
    p1, a1 = bird_forward(obs_batch[0], w1, w2)
    p1 = jax.block_until_ready(p1)
    a1 = jax.block_until_ready(a1)
    assert jnp.allclose(p1, probs_ref[0], atol=1e-5, rtol=1e-5), (p1, probs_ref[0])
    assert int(a1) == int(actions_ref[0]), (a1, actions_ref[0])

    print("KERNEL_OK")
</pallas_src>

<mosaic_0001>
module attributes {stable_mosaic.version = 11 : i64} {
  func.func @bird_kernel(%arg0: i32, %arg1: memref<8xf32, #tpu.memory_space<smem>>, %arg2: memref<8xf32, #tpu.memory_space<smem>>, %arg3: memref<2x128xf32, #tpu.memory_space<vmem>>, %arg4: memref<2x128xf32, #tpu.memory_space<vmem>>, %arg5: memref<1x128xi32, #tpu.memory_space<vmem>>) attributes {dimension_semantics = [#tpu.dimension_semantics<parallel>], iteration_bounds = array<i64: 1>, scalar_prefetch = 0 : i64, scratch_operands = 0 : i64, tpu.core_type = #tpu.core_type<tc>, window_params = [{transform_indices = @transform_0, window_bounds = array<i64: 8>}, {transform_indices = @transform_1, window_bounds = array<i64: 8>}, {transform_indices = @transform_2, window_bounds = array<i64: 2, 128>}, {transform_indices = @transform_3, window_bounds = array<i64: 2, 128>}, {transform_indices = @transform_4, window_bounds = array<i64: 1, 128>}]} {
    %c0 = arith.constant 0 : index
    %c0_0 = arith.constant 0 : index
    %0 = vector.load %arg3[%c0, %c0_0] : memref<2x128xf32, #tpu.memory_space<vmem>>, vector<1x128xf32>
    %c1 = arith.constant 1 : index
    %c0_1 = arith.constant 0 : index
    %1 = vector.load %arg3[%c1, %c0_1] : memref<2x128xf32, #tpu.memory_space<vmem>>, vector<1x128xf32>
    %c0_2 = arith.constant 0 : index
    %2 = memref.load %arg1[%c0_2] : memref<8xf32, #tpu.memory_space<smem>>
    %3 = vector.broadcast %2 : f32 to vector<1x128xf32>
    %4 = arith.mulf %3, %0 : vector<1x128xf32>
    %c1_3 = arith.constant 1 : index
    %5 = memref.load %arg1[%c1_3] : memref<8xf32, #tpu.memory_space<smem>>
    %6 = vector.broadcast %5 : f32 to vector<1x128xf32>
    %7 = arith.mulf %6, %1 : vector<1x128xf32>
    %8 = arith.addf %4, %7 : vector<1x128xf32>
    %9 = arith.negf %8 : vector<1x128xf32>
    %10 = math.exp %9 : vector<1x128xf32>
    %cst = arith.constant 1.000000e+00 : f32
    %11 = vector.broadcast %cst : f32 to vector<1x128xf32>
    %12 = arith.addf %11, %10 : vector<1x128xf32>
    %13 = arith.divf %11, %12 : vector<1x128xf32>
    %c2 = arith.constant 2 : index
    %14 = memref.load %arg1[%c2] : memref<8xf32, #tpu.memory_space<smem>>
    %15 = vector.broadcast %14 : f32 to vector<1x128xf32>
    %16 = arith.mulf %15, %0 : vector<1x128xf32>
    %c3 = arith.constant 3 : index
    %17 = memref.load %arg1[%c3] : memref<8xf32, #tpu.memory_space<smem>>
    %18 = vector.broadcast %17 : f32 to vector<1x128xf32>
    %19 = arith.mulf %18, %1 : vector<1x128xf32>
    %20 = arith.addf %16, %19 : vector<1x128xf32>
    %21 = arith.negf %20 : vector<1x128xf32>
    %22 = math.exp %21 : vector<1x128xf32>
    %cst_4 = arith.constant 1.000000e+00 : f32
    %23 = vector.broadcast %cst_4 : f32 to vector<1x128xf32>
    %24 = arith.addf %23, %22 : vector<1x128xf32>
    %25 = arith.divf %23, %24 : vector<1x128xf32>
    %c4 = arith.constant 4 : index
    %26 = memref.load %arg1[%c4] : memref<8xf32, #tpu.memory_space<smem>>
    %27 = vector.broadcast %26 : f32 to vector<1x128xf32>
    %28 = arith.mulf %27, %0 : vector<1x128xf32>
    %c5 = arith.constant 5 : index
    %29 = memref.load %arg1[%c5] : memref<8xf32, #tpu.memory_space<smem>>
    %30 = vector.broadcast %29 : f32 to vector<1x128xf32>
    %31 = arith.mulf %30, %1 : vector<1x128xf32>
    %32 = arith.addf %28, %31 : vector<1x128xf32>
    %33 = arith.negf %32 : vector<1x128xf32>
    %34 = math.exp %33 : vector<1x128xf32>
    %cst_5 = arith.constant 1.000000e+00 : f32
    %35 = vector.broadcast %cst_5 : f32 to vector<1x128xf32>
    %36 = arith.addf %35, %34 : vector<1x128xf32>
    %37 = arith.divf %35, %36 : vector<1x128xf32>
    %c6 = arith.constant 6 : index
    %38 = memref.load %arg1[%c6] : memref<8xf32, #tpu.memory_space<smem>>
    %39 = vector.broadcast %38 : f32 to vector<1x128xf32>
    %40 = arith.mulf %39, %0 : vector<1x128xf32>
    %c7 = arith.constant 7 : index
    %41 = memref.load %arg1[%c7] : memref<8xf32, #tpu.memory_space<smem>>
    %42 = vector.broadcast %41 : f32 to vector<1x128xf32>
    %43 = arith.mulf %42, %1 : vector<1x128xf32>
    %44 = arith.addf %40, %43 : vector<1x128xf32>
    %45 = arith.negf %44 : vector<1x128xf32>
    %46 = math.exp %45 : vector<1x128xf32>
    %cst_6 = arith.constant 1.000000e+00 : f32
    %47 = vector.broadcast %cst_6 : f32 to vector<1x128xf32>
    %48 = arith.addf %47, %46 : vector<1x128xf32>
    %49 = arith.divf %47, %48 : vector<1x128xf32>
    %c0_7 = arith.constant 0 : index
    %50 = memref.load %arg2[%c0_7] : memref<8xf32, #tpu.memory_space<smem>>
    %51 = vector.broadcast %50 : f32 to vector<1x128xf32>
    %52 = arith.mulf %51, %13 : vector<1x128xf32>
    %c1_8 = arith.constant 1 : index
    %53 = memref.load %arg2[%c1_8] : memref<8xf32, #tpu.memory_space<smem>>
    %54 = vector.broadcast %53 : f32 to vector<1x128xf32>
    %55 = arith.mulf %54, %25 : vector<1x128xf32>
    %56 = arith.addf %52, %55 : vector<1x128xf32>
    %c2_9 = arith.constant 2 : index
    %57 = memref.load %arg2[%c2_9] : memref<8xf32, #tpu.memory_space<smem>>
    %58 = vector.broadcast %57 : f32 to vector<1x128xf32>
    %59 = arith.mulf %58, %37 : vector<1x128xf32>
    %60 = arith.addf %56, %59 : vector<1x128xf32>
    %c3_10 = arith.constant 3 : index
    %61 = memref.load %arg2[%c3_10] : memref<8xf32, #tpu.memory_space<smem>>
    %62 = vector.broadcast %61 : f32 to vector<1x128xf32>
    %63 = arith.mulf %62, %49 : vector<1x128xf32>
    %64 = arith.addf %60, %63 : vector<1x128xf32>
    %c4_11 = arith.constant 4 : index
    %65 = memref.load %arg2[%c4_11] : memref<8xf32, #tpu.memory_space<smem>>
    %66 = vector.broadcast %65 : f32 to vector<1x128xf32>
    %67 = arith.mulf %66, %13 : vector<1x128xf32>
    %c5_12 = arith.constant 5 : index
    %68 = memref.load %arg2[%c5_12] : memref<8xf32, #tpu.memory_space<smem>>
    %69 = vector.broadcast %68 : f32 to vector<1x128xf32>
    %70 = arith.mulf %69, %25 : vector<1x128xf32>
    %71 = arith.addf %67, %70 : vector<1x128xf32>
    %c6_13 = arith.constant 6 : index
    %72 = memref.load %arg2[%c6_13] : memref<8xf32, #tpu.memory_space<smem>>
    %73 = vector.broadcast %72 : f32 to vector<1x128xf32>
    %74 = arith.mulf %73, %37 : vector<1x128xf32>
    %75 = arith.addf %71, %74 : vector<1x128xf32>
    %c7_14 = arith.constant 7 : index
    %76 = memref.load %arg2[%c7_14] : memref<8xf32, #tpu.memory_space<smem>>
    %77 = vector.broadcast %76 : f32 to vector<1x128xf32>
    %78 = arith.mulf %77, %49 : vector<1x128xf32>
    %79 = arith.addf %75, %78 : vector<1x128xf32>
    %c0_i32 = arith.constant 0 : i32
    %80 = vector.broadcast %c0_i32 : i32 to vector<1x128xi32>
    %81 = arith.cmpf ogt, %79, %64 : vector<1x128xf32>
    %c1_i32 = arith.constant 1 : i32
    %82 = vector.broadcast %c1_i32 : i32 to vector<1x128xi32>
    %83 = arith.select %81, %82, %80 : vector<1x128xi1>, vector<1x128xi32>
    %c0_15 = arith.constant 0 : index
    %c0_16 = arith.constant 0 : index
    %84 = vector.load %arg5[%c0_15, %c0_16] : memref<1x128xi32, #tpu.memory_space<vmem>>, vector<1x128xi32>
    tpu.vector_store %arg5[%c0_15, %c0_16], %83 {strides = array<i32>} : memref<1x128xi32, #tpu.memory_space<vmem>>, vector<1x128xi32>,
    %85 = arith.maximumf %64, %79 : vector<1x128xf32>
    %86 = arith.subf %64, %85 : vector<1x128xf32>
    %87 = math.exp %86 : vector<1x128xf32>
    %88 = arith.subf %79, %85 : vector<1x128xf32>
    %89 = math.exp %88 : vector<1x128xf32>
    %90 = arith.addf %87, %89 : vector<1x128xf32>
    %91 = arith.divf %87, %90 : vector<1x128xf32>
    %c0_17 = arith.constant 0 : index
    %c0_18 = arith.constant 0 : index
    %92 = vector.load %arg4[%c0_17, %c0_18] : memref<2x128xf32, #tpu.memory_space<vmem>>, vector<1x128xf32>
    tpu.vector_store %arg4[%c0_17, %c0_18], %91 {strides = array<i32>} : memref<2x128xf32, #tpu.memory_space<vmem>>, vector<1x128xf32>,
    %93 = arith.divf %89, %90 : vector<1x128xf32>
    %c1_19 = arith.constant 1 : index
    %c0_20 = arith.constant 0 : index
    %94 = vector.load %arg4[%c1_19, %c0_20] : memref<2x128xf32, #tpu.memory_space<vmem>>, vector<1x128xf32>
    tpu.vector_store %arg4[%c1_19, %c0_20], %93 {strides = array<i32>} : memref<2x128xf32, #tpu.memory_space<vmem>>, vector<1x128xf32>,
    return
  }
  func.func @transform_0(%arg0: i32) -> i32 {
    %c0_i32 = arith.constant 0 : i32
    %c0_i32_0 = arith.constant 0 : i32
    return %c0_i32 : i32
  }
  func.func @transform_1(%arg0: i32) -> i32 {
    %c0_i32 = arith.constant 0 : i32
    %c0_i32_0 = arith.constant 0 : i32
    return %c0_i32 : i32
  }
  func.func @transform_2(%arg0: i32) -> (i32, i32) {
    %c0_i32 = arith.constant 0 : i32
    %c0_i32_0 = arith.constant 0 : i32
    return %c0_i32, %arg0 : i32, i32
  }
  func.func @transform_3(%arg0: i32) -> (i32, i32) {
    %c0_i32 = arith.constant 0 : i32
    %c0_i32_0 = arith.constant 0 : i32
    return %c0_i32, %arg0 : i32, i32
  }
  func.func @transform_4(%arg0: i32) -> (i32, i32) {
    %c0_i32 = arith.constant 0 : i32
    %c0_i32_0 = arith.constant 0 : i32
    return %c0_i32, %arg0 : i32, i32
  }
}

</mosaic_0001>

<bundles_post_ra>
// kernel: bird_forward.1
= control target key start
LH: loop header
LB: loop body
LE: loop exit
PB: predicated region body
PF: predicated region fallthrough
CT: control target
= control target key end

     0   :  { %10 = vsyncpa [#allocation3], 0  ;;  %s402_s0 = inlined_call_operand.vmem [shape: f32[8], index: 0, kind: input, shape index: {}]   ;;  %s403_s1 = inlined_call_operand.vmem [shape: f32[8], index: 1, kind: input, shape index: {}]   ;;  %s404_s2 = inlined_call_operand.vmem [shape: f32[2,128], index: 2, kind: input, shape index: {}]   ;;  %s405_s3 = inlined_call_operand.vmem [shape: f32[2,128], index: 3, kind: output, shape index: {0}]   ;;  %s406_s4 = inlined_call_operand.vmem [shape: s32[1,128], index: 4, kind: output, shape index: {1}]  }
   0x1   :  { %s17_s17 = sshll.u32 %s402_s0, 4  ;;  %s18_s17 = int_to_ptr.vmem [resolvable:$true] %s17_s17 }
   0x2   :  { %11 = vsyncpa [#allocation5], 0  ;;  %s26_s20 = sshll.u32 %s403_s1, 4  ;;  %s287_s21 = smov [#allocation2]   ;;  %s27_s20 = int_to_ptr.vmem [resolvable:$true] %s26_s20 }
   0x3   :  { %20 = dma.vmem_to_smem %s18_s17, 16, %s287_s21, [#allocation3]  }
   0x4   :  { %s288_s22 = smov [#allocation4]  }
   0x5   :  { %29 = dma.vmem_to_smem %s27_s20, 16, %s288_s22, [#allocation5]  }
   0x6   :  { %283 = dma.done.wait [#allocation3], 16  }
   0x7   :  { %284 = vsyncadd [#allocation3], 4294967280 }
   0x8   :  { %285 = dma.done.wait [#allocation5], 16  }
   0x9   :  { %286 = vsyncadd [#allocation5], 4294967280 }
   0xa   :  { %40 = sfence }
   0xb   :  { %s43_s23 = sld [smem:[#allocation2]]  ;;  %v41_v0 = vld [vmem:[%s404_s2] sm:$0x1]  ;;  %v42_v1 = vld [vmem:[%s404_s2 + $0x1] sm:$0x1] }
   0xc   :  { %s216_s24 = sld [smem:[#allocation2 + $0x1]] }
   0xd   :  { %s218_s25 = sld [smem:[#allocation2 + $0x2]] }
   0xe   :  { %s219_s0 = sld [smem:[#allocation2 + $0x3]] }
   0xf   :  { %s221_s28 = sld [smem:[#allocation2 + $0x4]] }
  0x10   :  { %s222_s30 = sld [smem:[#allocation2 + $0x5]] }
  0x11   :  { %v44_v2 = vstv %s43_s23  ;;  %s224_s5 = sld [smem:[#allocation2 + $0x6]] }
  0x12   :  { %v45_v3 = vmul.f32 %v44_v2, %v41_v0  ;;  %v47_v4 = vstv %s216_s24  ;;  %s225_s6 = sld [smem:[#allocation2 + $0x7]] }
  0x13   :  { %v48_v5 = vmul.f32 %v47_v4, %v42_v1  ;;  %v70_v6 = vstv %s218_s25  ;;  %s327_s2 = sld [smem:[#allocation4]] }
  0x14   :  { %v71_v7 = vmul.f32 %v70_v6, %v41_v0  ;;  %v73_v8 = vstv %s219_s0  ;;  %s329_s7 = sld [smem:[#allocation4 + $0x1]] }
  0x15   :  { %v49_v9 = vadd.f32 %v48_v5, %v45_v3  ;;  %v74_v10 = vmul.f32 %v73_v8, %v42_v1  ;;  %v96_v11 = vstv %s221_s28  ;;  %s331_s8 = sld [smem:[#allocation4 + $0x2]] }
  0x16   :  { %v97_v12 = vmul.f32 %v96_v11, %v41_v0  ;;  %v99_v13 = vstv %s222_s30  ;;  %s333_s9 = sld [smem:[#allocation4 + $0x4]] }
  0x17   :  { %v217_v14 = vmul.f32 -1.442695, %v49_v9  ;;  %v75_v15 = vadd.f32 %v74_v10, %v71_v7  ;;  %v100_v16 = vmul.f32 %v99_v13, %v42_v1  ;;  %v122_v17 = vstv %s224_s5  ;;  %s342_s10 = sld [smem:[#allocation4 + $0x5]] }
  0x18   :  { %v123_v18 = vmul.f32 %v122_v17, %v41_v0  ;;  %v125_v19 = vstv %s225_s6  ;;  %s344_s11 = sld [smem:[#allocation4 + $0x6]] }
  0x19   :  { %237 = vpow2.f32 %v217_v14  ;;  %v220_v20 = vmul.f32 -1.442695, %v75_v15  ;;  %v101_v21 = vadd.f32 %v100_v16, %v97_v12  ;;  %v126_v22 = vmul.f32 %v125_v19, %v42_v1  ;;  %s358_s12 = sld [smem:[#allocation4 + $0x3]] }
  0x1a   :  { %v148_v38 = vstv %s327_s2  ;;  %v151_v40 = vstv %s329_s7  ;;  %s360_s13 = sld [smem:[#allocation4 + $0x7]] }
  0x1b   :  { %239 = vpow2.f32 %v220_v20  ;;  %v223_v23 = vmul.f32 -1.442695, %v101_v21  ;;  %v127_v24 = vadd.f32 %v126_v22, %v123_v18  ;;  %v155_v41 = vstv %s331_s8 }
  0x1c   :  { %v163_v42 = vstv %s333_s9 }
  0x1d   :  { %241 = vpow2.f32 %v223_v23  ;;  %v226_v25 = vmul.f32 -1.442695, %v127_v24  ;;  %v166_v10 = vstv %s342_s10 }
  0x1e   :  { %v170_v11 = vstv %s344_s11 }
  0x1f   :  { %v238_v26 = vpop.eup %237  ;;  %243 = vpow2.f32 %v226_v25  ;;  %v159_v24 = vstv %s358_s12 }
  0x20   :  { %v53_v27 = vadd.f32 1.0, %v238_v26  ;;  %v174_v26 = vstv %s360_s13 }
  0x21   :  { %v240_v28 = vpop.eup %239 }
  0x22   :  { %245 = vrcp.f32 %v53_v27  ;;  %v79_v30 = vadd.f32 1.0, %v240_v28  ;;  %v63_v35 = vand.u32 2147483647, %v53_v27  ;;  %v65_v36 = vand.u32 2147483648, %v53_v27 }
  0x23   :  { %v242_v29 = vpop.eup %241  ;;  %vm59_vm0 = vweird.f32 %v53_v27 }
  0x24   :  { %v105_v31 = vadd.f32 1.0, %v242_v29  ;;  %247 = vrcp.f32 %v79_v30  ;;  %v89_v39 = vand.u32 2147483647, %v79_v30  ;;  %v91_v45 = vand.u32 2147483648, %v79_v30 }
  0x25   :  { %v244_v32 = vpop.eup %243  ;;  %vm346_vm2 = vcmp.eq.f32.partialorder %v63_v35, 8.507059e+37  ;;  %v66_v48 = vor.u32 1.1754944e-38, %v65_v36  ;;  %vm85_vm3 = vweird.f32 %v79_v30 }
  0x26   :  { %249 = vrcp.f32 %v105_v31  ;;  %v335_v33 = vadd.f32 1.0, %v244_v32  ;;  %v117_v50 = vand.u32 2147483648, %v105_v31  ;;  %vm111_vm4 = vweird.f32 %v105_v31 }
  0x27   :  { %vm354_vm7 = vcmp.eq.f32.partialorder %v89_v39, 8.507059e+37  ;;  %v115_v56 = vand.u32 2147483647, %v105_v31  ;;  %v92_v59 = vor.u32 1.1754944e-38, %v91_v45 }
  0x28   :  { %v246_v34 = vpop.eup %245  ;;  %251 = vrcp.f32 %v335_v33  ;;  %v118_v62 = vor.u32 1.1754944e-38, %v117_v50  ;;  %vm137_vm9 = vweird.f32 %v335_v33  ;;  %v141_v3 = vand.u32 2147483647, %v335_v33 }
  0x29   :  { %v55_v37 = vmul.f32 %v246_v34, %v53_v27  ;;  %vm60_vm1 = vweird.f32 %v246_v34  ;;  %v143_v4 = vand.u32 2147483648, %v335_v33  ;;  %vm116_vm13 = vcmp.eq.f32.partialorder %v115_v56, 8.507059e+37 }
  0x2a   :  { %v248_v43 = vpop.eup %247  ;;  %vm350_vm5 = vmor %vm59_vm0, %vm60_vm1  ;;  %vm142_vm15 = vcmp.eq.f32.partialorder %v141_v3, 8.507059e+37 }
  0x2b   :  { %v56_v44 = vsub.f32 1.0, %v55_v37  ;;  %v81_v49 = vmul.f32 %v248_v43, %v79_v30  ;;  %vm86_vm6 = vweird.f32 %v248_v43  ;;  %v144_v18 = vor.u32 1.1754944e-38, %v143_v4 }
  0x2c   :  { %v250_v46 = vpop.eup %249  ;;  %vm368_vm10 = vmor %vm85_vm3, %vm86_vm6 }
  0x2d   :  { %v57_v51 = vmul.f32 %v246_v34, %v56_v44  ;;  %v107_v52 = vmul.f32 %v250_v46, %v105_v31  ;;  %v82_v54 = vsub.f32 1.0, %v81_v49  ;;  %vm112_vm8 = vweird.f32 %v250_v46 }
  0x2e   :  { %v252_v57 = vpop.eup %251  ;;  %vm377_vm11 = vmor %vm111_vm4, %vm112_vm8 }
  0x2f   :  { %v58_v58 = vadd.f32 %v246_v34, %v57_v51  ;;  %v108_v60 = vsub.f32 1.0, %v107_v52  ;;  %v83_v61 = vmul.f32 %v248_v43, %v82_v54  ;;  %v133_v63 = vmul.f32 %v252_v57, %v335_v33 }
  0x30   :  { %vm138_vm12 = vweird.f32 %v252_v57 }
  0x31   :  { %v62_v0 = vsel %vm350_vm5, %v246_v34, %v58_v58  ;;  %v109_v2 = vmul.f32 %v250_v46, %v108_v60  ;;  %v84_v6 = vadd.f32 %v248_v43, %v83_v61  ;;  %v134_v8 = vsub.f32 1.0, %v133_v63  ;;  %vm139_vm14 = vmor %vm137_vm9, %vm138_vm12 }
  0x32   :  { %v67_v5 = vsel %vm346_vm2, %v66_v48, %v62_v0 }
  0x33   :  { %v110_v9 = vadd.f32 %v250_v46, %v109_v2  ;;  %v88_v12 = vsel %vm368_vm10, %v248_v43, %v84_v6  ;;  %v135_v13 = vmul.f32 %v252_v57, %v134_v8  ;;  %v149_v14 = vmul.f32 %v148_v38, %v67_v5 }
  0x34   :  { %v164_v15 = vmul.f32 %v163_v42, %v67_v5  ;;  %v93_v16 = vsel %vm354_vm7, %v92_v59, %v88_v12  ;;  %v289_v38 = vmov 0  }
  0x35   :  { %v114_v17 = vsel %vm377_vm11, %v250_v46, %v110_v9  ;;  %v136_v20 = vadd.f32 %v252_v57, %v135_v13  ;;  %v152_v21 = vmul.f32 %v151_v40, %v93_v16  ;;  %v167_v22 = vmul.f32 %v166_v10, %v93_v16 }
  0x36   :  { %v119_v19 = vsel %vm116_vm13, %v118_v62, %v114_v17 }
  0x37   :  { %v156_v23 = vmul.f32 %v155_v41, %v119_v19  ;;  %v171_v25 = vmul.f32 %v170_v11, %v119_v19  ;;  %v140_v27 = vsel %vm139_vm14, %v252_v57, %v136_v20  ;;  %v153_v28 = vadd.f32 %v152_v21, %v149_v14 }
  0x38   :  { %v168_v29 = vadd.f32 %v167_v22, %v164_v15  ;;  %v145_v30 = vsel %vm142_vm15, %v144_v18, %v140_v27 }
  0x39   :  { %v157_v31 = vadd.f32 %v156_v23, %v153_v28  ;;  %v160_v32 = vmul.f32 %v159_v24, %v145_v30  ;;  %v175_v35 = vmul.f32 %v174_v26, %v145_v30 }
  0x3a   :  { %v172_v34 = vadd.f32 %v171_v25, %v168_v29 }
  0x3b   :  { %v161_v33 = vadd.f32 %v160_v32, %v157_v31 }
  0x3c   :  { %v176_v36 = vadd.f32 %v175_v35, %v172_v34 }
  0x3e   :  { %vm177_vm0 = vcmp.gt.f32.partialorder %v176_v36, %v161_v33  ;;  %v180_v37 = vmax.f32 %v161_v33, %v176_v36 }
  0x3f   :  { %v178_v39 = vsel %vm177_vm0, 1, %v289_v38 }
  0x40   :  { %179 = vst [vmem:[%s406_s4] sm:$0x1] %v178_v39  ;;  %v184_v40 = vsub.f32 %v176_v36, %v180_v37  ;;  %v181_v41 = vsub.f32 %v161_v33, %v180_v37 }
  0x42   :  { %v185_v42 = vmul.f32 1.442695, %v184_v40  ;;  %v182_v43 = vmul.f32 1.442695, %v181_v41 }
  0x44   :  { %253 = vpow2.f32 %v185_v42 }
  0x45   :  { %255 = vpow2.f32 %v182_v43 }
  0x4a   :  { %v254_v44 = vpop.eup %253 }
  0x4b   :  { %v256_v45 = vpop.eup %255 }
  0x4c   :  { %v187_v46 = vadd.f32 %v256_v45, %v254_v44 }
  0x4e   :  { %257 = vrcp.f32 %v187_v46  ;;  %v199_v49 = vand.u32 2147483648, %v187_v46  ;;  %vm193_vm1 = vweird.f32 %v187_v46  ;;  %v197_v51 = vand.u32 2147483647, %v187_v46 }
  0x50   :  { %v200_v53 = vor.u32 1.1754944e-38, %v199_v49  ;;  %vm198_vm4 = vcmp.eq.f32.partialorder %v197_v51, 8.507059e+37 }
  0x54   :  { %v258_v47 = vpop.eup %257 }
  0x55   :  { %v189_v48 = vmul.f32 %v258_v47, %v187_v46  ;;  %vm194_vm2 = vweird.f32 %v258_v47 }
  0x56   :  { %vm195_vm3 = vmor %vm193_vm1, %vm194_vm2 }
  0x57   :  { %v190_v50 = vsub.f32 1.0, %v189_v48 }
  0x59   :  { %v191_v52 = vmul.f32 %v258_v47, %v190_v50 }
  0x5b   :  { %v192_v54 = vadd.f32 %v258_v47, %v191_v52 }
  0x5d   :  { %v196_v55 = vsel %vm195_vm3, %v258_v47, %v192_v54 }
  0x5e   :  { %v201_v56 = vsel %vm198_vm4, %v200_v53, %v196_v55 }
  0x5f   :  { %v202_v57 = vmul.f32 %v256_v45, %v201_v56  ;;  %v204_v58 = vmul.f32 %v254_v44, %v201_v56 }
  0x61   :  { %203 = vst [vmem:[%s405_s3] sm:$0x1] %v202_v57 }
  0x62   :  { %205 = vst [vmem:[%s405_s3 + $0x1] sm:$0x1] %v204_v58 }
  0x63   :  { %214 = vsyncpa [#allocation3], 1 }
  0x64   :  { %215 = vsyncpa [#allocation5], 1 }

</bundles_post_ra>
